<compile_context>
chip_gen: v6e
topology: v6e:2x2x1
jax: 0.10.0
libtpu: 0.0.40
codegen_flags: <defaults>
</compile_context>

<pallas_src>
import functools

import jax
import jax.numpy as jnp
from jax.experimental import pallas as pl
from jax.experimental.pallas import tpu as pltpu

EPS = 1e-5
K_IN = 28 * 28           # 784
K_PAD = 896              # 7 * 128, lane-aligned contraction dim
N_OUT = 10
N_PAD = 128              # lane-dense logits / output stores
NEG_BIG = -1e30          # bias for padded logit columns -> exp(.) == 0 exactly
VMEM_LIMIT = 32 * 1024 * 1024
SMALL_FUSED_BYTES = 12 * 1024 * 1024   # single-block budget (fits v5e scoped VMEM)


# ----------------------------- kernels --------------------------------------

def _fused_kernel(x_ref, w1_ref, b1_ref, g_ref, beta_ref, w2_ref, b2_ref, o_ref):
    """Whole forward resident in VMEM — small-batch / latency path."""
    h = jnp.dot(x_ref[...], w1_ref[...],
                preferred_element_type=jnp.float32) + b1_ref[...]
    # BatchNorm1d (training): batch mean / biased variance, folded to scale+shift.
    mean = jnp.mean(h, axis=0, keepdims=True)
    var = jnp.mean(h * h, axis=0, keepdims=True) - mean * mean
    scale = g_ref[...] * jax.lax.rsqrt(var + EPS)
    shift = beta_ref[...] - mean * scale
    hn = h * scale + shift
    logits = jnp.dot(hn.astype(jnp.bfloat16), w2_ref[...],
                     preferred_element_type=jnp.float32) + b2_ref[...]
    # log_softmax over the lane axis; padded columns sit at -1e30 and vanish.
    m = jnp.max(logits, axis=1, keepdims=True)
    s = logits - m
    lse = jnp.log(jnp.sum(jnp.exp(s), axis=1, keepdims=True))
    o_ref[...] = s - lse


def _pass1_kernel(x_ref, w1_ref, b1_ref, h_ref, pstats_ref, *, batch, block_rows):
    """Tiled pass 1: h = x @ W1 + b1 and per-tile BN partial sums."""
    h = jnp.dot(x_ref[...], w1_ref[...],
                preferred_element_type=jnp.float32) + b1_ref[...]
    h_ref[...] = h.astype(h_ref.dtype)
    # Mask rows past the true batch (zero-padded x rows would still pick up b1).
    row0 = pl.program_id(0) * block_rows
    rows = row0 + jax.lax.broadcasted_iota(jnp.int32, (block_rows, 1), 0)
    hm = jnp.where(rows < batch, h, 0.0)
    s1 = jnp.sum(hm, axis=0, keepdims=True)          # (1, H)
    s2 = jnp.sum(hm * hm, axis=0, keepdims=True)     # (1, H)
    pstats_ref[...] = jnp.concatenate([s1, s2], axis=0)[None]   # (1, 2, H)


def _pass2_kernel(h_ref, scale_ref, shift_ref, w2_ref, b2_ref, o_ref):
    """Tiled pass 2: folded BN + second Linear + log_softmax."""
    hn = h_ref[...].astype(jnp.float32) * scale_ref[...] + shift_ref[...]
    logits = jnp.dot(hn.astype(jnp.bfloat16), w2_ref[...],
                     preferred_element_type=jnp.float32) + b2_ref[...]
    m = jnp.max(logits, axis=1, keepdims=True)
    s = logits - m
    lse = jnp.log(jnp.sum(jnp.exp(s), axis=1, keepdims=True))
    o_ref[...] = s - lse


# ----------------------------- wrapper ---------------------------------------

@functools.partial(jax.jit, static_argnames=("block_rows", "force_tiled"))
def mlp_forward(x_nchw, params, *, block_rows=512, force_tiled=False):
    """Forward pass. `params` is the output of pack_params()."""
    w1, b1, gamma, beta, w2, b2 = params
    B = x_nchw.shape[0]
    H = w1.shape[1]
    assert H % 128 == 0, "hidden size must be a multiple of 128"
    assert block_rows % 8 == 0

    # torch .view(-1, 784), bf16 cast, zero-pad K to 896 lanes (one fused XLA op).
    x = x_nchw.reshape(B, K_IN).astype(jnp.bfloat16)
    x = jnp.pad(x, ((0, 0), (0, K_PAD - K_IN)))

    b1r = b1.reshape(1, H)
    b2r = b2.reshape(1, N_PAD)

    fused_bytes = (B * K_PAD * 2 + K_PAD * H * 2 + H * N_PAD * 2
                   + 3 * B * H * 4 + B * N_PAD * 4)
    if not force_tiled and fused_bytes <= SMALL_FUSED_BYTES:
        out = pl.pallas_call(
            _fused_kernel,
            out_shape=jax.ShapeDtypeStruct((B, N_PAD), jnp.float32),
            in_specs=[pl.BlockSpec(memory_space=pltpu.MemorySpace.VMEM)] * 7,
            out_specs=pl.BlockSpec(memory_space=pltpu.MemorySpace.VMEM),
            compiler_params=pltpu.CompilerParams(vmem_limit_bytes=VMEM_LIMIT),
        )(x, w1, b1r, gamma.reshape(1, H), beta.reshape(1, H), w2, b2r)
        return out[:, :N_OUT]

    # --------------------- tiled two-pass path -------------------------------
    nb = pl.cdiv(B, block_rows)
    b_pad = nb * block_rows
    x = jnp.pad(x, ((0, b_pad - B), (0, 0)))

    h, pstats = pl.pallas_call(
        functools.partial(_pass1_kernel, batch=B, block_rows=block_rows),
        grid=(nb,),
        in_specs=[
            pl.BlockSpec((block_rows, K_PAD), lambda i: (i, 0)),   # x tile
            pl.BlockSpec((K_PAD, H), lambda i: (0, 0)),            # w1 resident
            pl.BlockSpec((1, H), lambda i: (0, 0)),                # b1 resident
        ],
        out_specs=(
            pl.BlockSpec((block_rows, H), lambda i: (i, 0)),       # h tile
            pl.BlockSpec((1, 2, H), lambda i: (i, 0, 0)),          # partial stats
        ),
        out_shape=(
            jax.ShapeDtypeStruct((b_pad, H), jnp.bfloat16),
            jax.ShapeDtypeStruct((nb, 2, H), jnp.float32),
        ),
        compiler_params=pltpu.CompilerParams(
            dimension_semantics=("parallel",),
            vmem_limit_bytes=VMEM_LIMIT),
    )(x, w1, b1r)

    # Tiny O(H) cross-tile reduction + BN fold in XLA.
    stats = jnp.sum(pstats, axis=0)                  # (2, H)
    mean = stats[0] / B
    var = stats[1] / B - mean * mean                 # biased variance
    scale = gamma * jax.lax.rsqrt(var + EPS)
    shift = beta - mean * scale

    out = pl.pallas_call(
        _pass2_kernel,
        grid=(nb,),
        in_specs=[
            pl.BlockSpec((block_rows, H), lambda i: (i, 0)),       # h tile
            pl.BlockSpec((1, H), lambda i: (0, 0)),                # scale resident
            pl.BlockSpec((1, H), lambda i: (0, 0)),                # shift resident
            pl.BlockSpec((H, N_PAD), lambda i: (0, 0)),            # w2 resident
            pl.BlockSpec((1, N_PAD), lambda i: (0, 0)),            # b2 resident
        ],
        out_specs=pl.BlockSpec((block_rows, N_PAD), lambda i: (i, 0)),
        out_shape=jax.ShapeDtypeStruct((b_pad, N_PAD), jnp.float32),
        compiler_params=pltpu.CompilerParams(
            dimension_semantics=("parallel",),
            vmem_limit_bytes=VMEM_LIMIT),
    )(h, scale.reshape(1, H), shift.reshape(1, H), w2, b2r)

    return out[:B, :N_OUT]


# ----------------------------- params ----------------------------------------

def init_params(key, hidden=256):
    """PyTorch-style init (uniform ±1/sqrt(fan_in)); f32 master params.
    Linear weights are stored transposed as (in, out)."""
    k1, k2, k3, k4 = jax.random.split(key, 4)
    bound1 = 1.0 / (K_IN ** 0.5)
    w1 = jax.random.uniform(k1, (K_IN, hidden), jnp.float32, -bound1, bound1)
    b1 = jax.random.uniform(k2, (hidden,), jnp.float32, -bound1, bound1)
    gamma = jnp.ones((hidden,), jnp.float32)    # BatchNorm1d weight
    beta = jnp.zeros((hidden,), jnp.float32)    # BatchNorm1d bias
    bound2 = 1.0 / (hidden ** 0.5)
    w2 = jax.random.uniform(k3, (hidden, N_OUT), jnp.float32, -bound2, bound2)
    b2 = jax.random.uniform(k4, (N_OUT,), jnp.float32, -bound2, bound2)
    return w1, b1, gamma, beta, w2, b2


def pack_params(w1, b1, gamma, beta, w2, b2):
    """Kernel-side layout: bf16 weights, K padded to 896, second-linear N
    padded to 128 (padded bias entries = -1e30 so they vanish in softmax)."""
    H = w1.shape[1]
    assert H % 128 == 0, "hidden size must be a multiple of 128"
    w1p = jnp.pad(w1, ((0, K_PAD - K_IN), (0, 0))).astype(jnp.bfloat16)
    w2p = jnp.pad(w2, ((0, 0), (0, N_PAD - N_OUT))).astype(jnp.bfloat16)
    b2p = jnp.full((N_PAD,), NEG_BIG, jnp.float32).at[:N_OUT].set(b2)
    return (w1p, b1.astype(jnp.float32), gamma.astype(jnp.float32),
            beta.astype(jnp.float32), w2p, b2p)


# ----------------------------- reference -------------------------------------

def _reference(x_nchw, w1, b1, gamma, beta, w2, b2):
    x = x_nchw.reshape(x_nchw.shape[0], K_IN).astype(jnp.float32)
    h = jnp.dot(x, w1, precision=jax.lax.Precision.HIGHEST) + b1
    mean = jnp.mean(h, axis=0, keepdims=True)
    var = jnp.mean((h - mean) ** 2, axis=0, keepdims=True)
    hn = (h - mean) / jnp.sqrt(var + EPS) * gamma + beta
    logits = jnp.dot(hn, w2, precision=jax.lax.Precision.HIGHEST) + b2
    return jax.nn.log_softmax(logits, axis=1)


# ----------------------------- demo ------------------------------------------

if __name__ == "__main__":
    key = jax.random.PRNGKey(0)
    kx, kp = jax.random.split(key)

    hidden = 256
    raw = init_params(kp, hidden=hidden)
    packed = pack_params(*raw)

    # Small batch: single fused VMEM-resident kernel (latency path).
    batch = 8
    x = jax.random.normal(kx, (batch, 1, 28, 28), jnp.float32)   # NCHW, MNIST-like
    out = jax.block_until_ready(mlp_forward(x, packed))
    ref = _reference(x, *raw)
    assert out.shape == (batch, 10)
    # bf16 MXU operands -> compare against the f32 reference with loose tolerance.
    assert jnp.allclose(out, ref, atol=3e-2, rtol=3e-2), "fused path mismatch"
    assert jnp.allclose(jnp.sum(jnp.exp(out), axis=1), 1.0, atol=1e-3)

    # Larger batch (not a tile multiple): exercises the batch-tiled two-pass
    # pipeline with cross-tile BN stats and row masking.
    batch2 = 200
    x2 = jax.random.normal(jax.random.fold_in(kx, 1), (batch2, 1, 28, 28), jnp.float32)
    out2 = jax.block_until_ready(
        mlp_forward(x2, packed, block_rows=128, force_tiled=True))
    ref2 = _reference(x2, *raw)
    assert out2.shape == (batch2, 10)
    assert jnp.allclose(out2, ref2, atol=3e-2, rtol=3e-2), "tiled path mismatch"
    assert jnp.allclose(jnp.sum(jnp.exp(out2), axis=1), 1.0, atol=1e-3)

    print("KERNEL_OK")
</pallas_src>

<mosaic_0001>
module attributes {stable_mosaic.version = 11 : i64} {
  func.func @_fused_kernel(%arg0: memref<8x896xbf16, #tpu.memory_space<vmem>>, %arg1: memref<896x256xbf16, #tpu.memory_space<vmem>>, %arg2: memref<1x256xf32, #tpu.memory_space<vmem>>, %arg3: memref<1x256xf32, #tpu.memory_space<vmem>>, %arg4: memref<1x256xf32, #tpu.memory_space<vmem>>, %arg5: memref<256x128xbf16, #tpu.memory_space<vmem>>, %arg6: memref<1x128xf32, #tpu.memory_space<vmem>>, %arg7: memref<8x128xf32, #tpu.memory_space<vmem>>) attributes {dimension_semantics = [], scalar_prefetch = 0 : i64, scratch_operands = 0 : i64, tpu.core_type = #tpu.core_type<tc>} {
    %c0 = arith.constant 0 : index
    %c0_0 = arith.constant 0 : index
    %0 = vector.load %arg0[%c0, %c0_0] : memref<8x896xbf16, #tpu.memory_space<vmem>>, vector<8x896xbf16>
    %c0_1 = arith.constant 0 : index
    %c0_2 = arith.constant 0 : index
    %1 = vector.load %arg1[%c0_1, %c0_2] : memref<896x256xbf16, #tpu.memory_space<vmem>>, vector<896x256xbf16>
    %cst = arith.constant dense<0.000000e+00> : vector<8x256xf32>
    %2 = tpu.matmul %0, %1, %cst {dimension_numbers = #tpu.dot_dimension_numbers<[1], [0], [0], [1], [0, 0, 1, 1], [], []>} : vector<8x896xbf16>, vector<896x256xbf16>, vector<8x256xf32> -> vector<8x256xf32>
    %c0_3 = arith.constant 0 : index
    %c0_4 = arith.constant 0 : index
    %3 = vector.load %arg2[%c0_3, %c0_4] : memref<1x256xf32, #tpu.memory_space<vmem>>, vector<1x256xf32>
    %4 = vector.broadcast %3 : vector<1x256xf32> to vector<8x256xf32>
    %5 = arith.addf %2, %4 : vector<8x256xf32>
    %cst_5 = arith.constant dense<0.000000e+00> : vector<256xf32>
    %6 = vector.multi_reduction <add>, %5, %cst_5 [0] : vector<8x256xf32> to vector<256xf32>
    %7 = vector.shape_cast %6 : vector<256xf32> to vector<1x256xf32>
    %cst_6 = arith.constant 8.000000e+00 : f32
    %8 = vector.broadcast %cst_6 : f32 to vector<1x256xf32>
    %9 = arith.divf %7, %8 : vector<1x256xf32>
    %10 = arith.mulf %5, %5 : vector<8x256xf32>
    %cst_7 = arith.constant dense<0.000000e+00> : vector<256xf32>
    %11 = vector.multi_reduction <add>, %10, %cst_7 [0] : vector<8x256xf32> to vector<256xf32>
    %12 = vector.shape_cast %11 : vector<256xf32> to vector<1x256xf32>
    %cst_8 = arith.constant 8.000000e+00 : f32
    %13 = vector.broadcast %cst_8 : f32 to vector<1x256xf32>
    %14 = arith.divf %12, %13 : vector<1x256xf32>
    %15 = arith.mulf %9, %9 : vector<1x256xf32>
    %16 = arith.subf %14, %15 : vector<1x256xf32>
    %c0_9 = arith.constant 0 : index
    %c0_10 = arith.constant 0 : index
    %17 = vector.load %arg3[%c0_9, %c0_10] : memref<1x256xf32, #tpu.memory_space<vmem>>, vector<1x256xf32>
    %cst_11 = arith.constant 9.99999974E-6 : f32
    %18 = vector.broadcast %cst_11 : f32 to vector<1x256xf32>
    %19 = arith.addf %16, %18 : vector<1x256xf32>
    %20 = math.rsqrt %19 : vector<1x256xf32>
    %21 = arith.mulf %17, %20 : vector<1x256xf32>
    %c0_12 = arith.constant 0 : index
    %c0_13 = arith.constant 0 : index
    %22 = vector.load %arg4[%c0_12, %c0_13] : memref<1x256xf32, #tpu.memory_space<vmem>>, vector<1x256xf32>
    %23 = arith.mulf %9, %21 : vector<1x256xf32>
    %24 = arith.subf %22, %23 : vector<1x256xf32>
    %25 = vector.broadcast %21 : vector<1x256xf32> to vector<8x256xf32>
    %26 = arith.mulf %5, %25 : vector<8x256xf32>
    %27 = vector.broadcast %24 : vector<1x256xf32> to vector<8x256xf32>
    %28 = arith.addf %26, %27 : vector<8x256xf32>
    %29 = arith.truncf %28 : vector<8x256xf32> to vector<8x256xbf16>
    %c0_14 = arith.constant 0 : index
    %c0_15 = arith.constant 0 : index
    %30 = vector.load %arg5[%c0_14, %c0_15] : memref<256x128xbf16, #tpu.memory_space<vmem>>, vector<256x128xbf16>
    %cst_16 = arith.constant dense<0.000000e+00> : vector<8x128xf32>
    %31 = tpu.matmul %29, %30, %cst_16 {dimension_numbers = #tpu.dot_dimension_numbers<[1], [0], [0], [1], [0, 0, 1, 1], [], []>} : vector<8x256xbf16>, vector<256x128xbf16>, vector<8x128xf32> -> vector<8x128xf32>
    %c0_17 = arith.constant 0 : index
    %c0_18 = arith.constant 0 : index
    %32 = vector.load %arg6[%c0_17, %c0_18] : memref<1x128xf32, #tpu.memory_space<vmem>>, vector<1x128xf32>
    %33 = vector.broadcast %32 : vector<1x128xf32> to vector<8x128xf32>
    %34 = arith.addf %31, %33 : vector<8x128xf32>
    %cst_19 = arith.constant dense<0xFF800000> : vector<8xf32>
    %35 = vector.multi_reduction <maximumf>, %34, %cst_19 [1] : vector<8x128xf32> to vector<8xf32>
    %36 = vector.shape_cast %35 : vector<8xf32> to vector<8x1xf32>
    %37 = vector.broadcast %36 : vector<8x1xf32> to vector<8x128xf32>
    %38 = arith.subf %34, %37 : vector<8x128xf32>
    %39 = math.exp %38 : vector<8x128xf32>
    %cst_20 = arith.constant dense<0.000000e+00> : vector<8xf32>
    %40 = vector.multi_reduction <add>, %39, %cst_20 [1] : vector<8x128xf32> to vector<8xf32>
    %41 = vector.shape_cast %40 : vector<8xf32> to vector<8x1xf32>
    %42 = math.log %41 : vector<8x1xf32>
    %43 = vector.broadcast %42 : vector<8x1xf32> to vector<8x128xf32>
    %44 = arith.subf %38, %43 : vector<8x128xf32>
    %c0_21 = arith.constant 0 : index
    %c0_22 = arith.constant 0 : index
    %45 = vector.load %arg7[%c0_21, %c0_22] : memref<8x128xf32, #tpu.memory_space<vmem>>, vector<8x128xf32>
    tpu.vector_store %arg7[%c0_21, %c0_22], %44 {strides = array<i32>} : memref<8x128xf32, #tpu.memory_space<vmem>>, vector<8x128xf32>,
    return
  }
}

</mosaic_0001>

<bundles_post_ra>
// kernel: mlp_forward.1
= control target key start
LH: loop header
LB: loop body
LE: loop exit
PB: predicated region body
PF: predicated region fallthrough
CT: control target
= control target key end

     0   :  { %12 = vsyncpa [#allocation3], 0  ;;  %s1783_s0 = inlined_call_operand.vmem [shape: bf16[8,896], index: 0, kind: input, shape index: {}]   ;;  %s1784_s1 = inlined_call_operand.hbm [shape: bf16[896,256], index: 1, kind: input, shape index: {}]   ;;  %s1785_s2 = inlined_call_operand.vmem [shape: f32[1,256], index: 2, kind: input, shape index: {}]   ;;  %s1786_s3 = inlined_call_operand.vmem [shape: f32[1,256], index: 3, kind: input, shape index: {}]   ;;  %s1787_s4 = inlined_call_operand.vmem [shape: f32[1,256], index: 4, kind: input, shape index: {}]   ;;  %s1788_s5 = inlined_call_operand.vmem [shape: bf16[256,128], index: 5, kind: input, shape index: {}]   ;;  %s1789_s6 = inlined_call_operand.vmem [shape: f32[1,128], index: 6, kind: input, shape index: {}]   ;;  %s1790_s7 = inlined_call_operand.hbm [shape: f32[8,128], index: 7, kind: output, shape index: {}]  }
   0x1   :  { %13 = vsyncpa [#allocation4], 0  ;;  %s1636_s24 = smov [#allocation2]  }
   0x2   :  { %s21_s25 = sshll.u32 %s1636_s24, 4  ;;  %s22_s25 = int_to_ptr.vmem [resolvable:$true] %s21_s25 }
   0x3   :  { %s1600_s26 = scalar_lea.vmem %s22_s25, 14336  ;;  %p1605_p1 = scmp.lt.s32.totalorder %s22_s25, %s22_s25 }
   0x4   :  { %p1601_p0 = scmp.ne.s32.totalorder %s22_s25, %s1600_s26  ;;  %p1606_p2 = scmp.lt.s32.totalorder %s1600_s26, %s1600_s26 }
   0x6   :  { %p1607_p3 = por %p1606_p2, %p1605_p1 }
   0x8   :  { %p1608_p4 = pnand %p1607_p3, %p1601_p0 }
   0xa   :  { %1611 = shalt.err (!%p1608_p4)
}
   0xb   :  { %s1637_s27 = smov 128   ;;  %s1638_s28 = smov 8  }
   0xc   :  { %27 = dma.hbm_to_vmem [thread:$0]  %s1784_s1, 14336, %s22_s25, [#allocation3], %s1637_s27, %s1637_s27, %s1638_s28  }
   0xd   :  { %1632 = dma.done.wait [#allocation3], 14336  }
   0xe   :  { %1633 = vsyncadd [#allocation3], 4294952960  ;;  %v1393_v0 = vld [vmem:[#allocation2 + $0x74] ss:$8 sps:$4 sm:$0xff]   ;;  %v1395_v1 = vld [vmem:[#allocation2 + $0x70] ss:$8 sps:$4 sm:$0xff]  }
   0xf   :  { %755 = vmatprep.subr.bf16.mxu0 %v1393_v0  ;;  %v1396_v2 = vld [vmem:[#allocation2 + $0x174] ss:$8 sps:$4 sm:$0xff]   ;;  %v1398_v3 = vld [vmem:[#allocation2 + $0x170] ss:$8 sps:$4 sm:$0xff]   ;;  %v1399_v4 = vld [vmem:[#allocation2 + $0x64] ss:$8 sps:$4 sm:$0xff]  }
  0x10   :  { %756 = vmatpush1.bf16.msra.mxu0 %v1395_v1  ;;  %v1401_v5 = vld [vmem:[#allocation2 + $0x60] ss:$8 sps:$4 sm:$0xff]   ;;  %796 = vmatprep.subr.bf16.mxu1 %v1396_v2  ;;  %v1402_v6 = vld [vmem:[#allocation2 + $0x164] ss:$8 sps:$4 sm:$0xff]   ;;  %v1405_v8 = vld [vmem:[#allocation2 + $0x54] ss:$8 sps:$4 sm:$0xff]  }
  0x11   :  { %797 = vmatpush1.bf16.msra.mxu1 %v1398_v3  ;;  %757 = vmatprep.subr.bf16.mxu0 %v1399_v4  ;;  %v1404_v7 = vld [vmem:[#allocation2 + $0x160] ss:$8 sps:$4 sm:$0xff]   ;;  %v1407_v9 = vld [vmem:[#allocation2 + $0x50] ss:$8 sps:$4 sm:$0xff]   ;;  %v1408_v10 = vld [vmem:[#allocation2 + $0x154] ss:$8 sps:$4 sm:$0xff]  }
  0x12   :  { %798 = vmatprep.subr.bf16.mxu1 %v1402_v6  ;;  %v1411_v11 = vld [vmem:[#allocation2 + $0x44] ss:$8 sps:$4 sm:$0xff]   ;;  %v1410_v12 = vld [vmem:[#allocation2 + $0x150] ss:$8 sps:$4 sm:$0xff]   ;;  %v1413_v14 = vld [vmem:[#allocation2 + $0x40] ss:$8 sps:$4 sm:$0xff]  }
  0x13   :  { %v1414_v13 = vld [vmem:[#allocation2 + $0x144] ss:$8 sps:$4 sm:$0xff]   ;;  %v1417_v15 = vld [vmem:[#allocation2 + $0x34] ss:$8 sps:$4 sm:$0xff]   ;;  %v1416_v16 = vld [vmem:[#allocation2 + $0x140] ss:$8 sps:$4 sm:$0xff]  }
  0x14   :  { %758 = vmatpush1.bf16.msra.mxu0 %v1401_v5  ;;  %v1420_v17 = vld [vmem:[#allocation2 + $0x134] ss:$8 sps:$4 sm:$0xff]   ;;  %v1419_v18 = vld [vmem:[#allocation2 + $0x30] ss:$8 sps:$4 sm:$0xff]   ;;  %v1423_v19 = vld [vmem:[#allocation2 + $0x24] ss:$8 sps:$4 sm:$0xff]  }
  0x15   :  { %759 = vmatprep.subr.bf16.mxu0 %v1405_v8  ;;  %799 = vmatpush1.bf16.msra.mxu1 %v1404_v7  ;;  %v1422_v20 = vld [vmem:[#allocation2 + $0x130] ss:$8 sps:$4 sm:$0xff]   ;;  %v1426_v21 = vld [vmem:[#allocation2 + $0x124] ss:$8 sps:$4 sm:$0xff]   ;;  %v1425_v22 = vld [vmem:[#allocation2 + $0x20] ss:$8 sps:$4 sm:$0xff]  }
  0x16   :  { %800 = vmatprep.subr.bf16.mxu1 %v1408_v10  ;;  %v1429_v23 = vld [vmem:[#allocation2 + $0x14] ss:$8 sps:$4 sm:$0xff]   ;;  %v1428_v24 = vld [vmem:[#allocation2 + $0x120] ss:$8 sps:$4 sm:$0xff]   ;;  %v1431_v26 = vld [vmem:[#allocation2 + $0x10] ss:$8 sps:$4 sm:$0xff]  }
  0x17   :  { %v1432_v25 = vld [vmem:[#allocation2 + $0x114] ss:$8 sps:$4 sm:$0xff]   ;;  %v1435_v27 = vld [vmem:[#allocation2 + $0x4] ss:$8 sps:$4 sm:$0xff]   ;;  %v1434_v28 = vld [vmem:[#allocation2 + $0x110] ss:$8 sps:$4 sm:$0xff]  }
  0x18   :  { %760 = vmatpush1.bf16.msra.mxu0 %v1407_v9  ;;  %v1438_v29 = vld [vmem:[#allocation2 + $0x104] ss:$8 sps:$4 sm:$0xff]   ;;  %v1437_v30 = vld [vmem:[#allocation2] ss:$8 sps:$4 sm:$0xff]   ;;  %v1441_v31 = vld [vmem:[#allocation2 + $0xf4] ss:$8 sps:$4 sm:$0xff]  }
  0x19   :  { %761 = vmatprep.subr.bf16.mxu0 %v1411_v11  ;;  %801 = vmatpush1.bf16.msra.mxu1 %v1410_v12  ;;  %v1440_v32 = vld [vmem:[#allocation2 + $0x100] ss:$8 sps:$4 sm:$0xff]   ;;  %v1444_v33 = vld [vmem:[#allocation2 + $0x1f4] ss:$8 sps:$4 sm:$0xff]   ;;  %v1443_v34 = vld [vmem:[#allocation2 + $0xf0] ss:$8 sps:$4 sm:$0xff]  }
  0x1a   :  { %802 = vmatprep.subr.bf16.mxu1 %v1414_v13  ;;  %v1447_v35 = vld [vmem:[#allocation2 + $0xe4] ss:$8 sps:$4 sm:$0xff]   ;;  %v1446_v36 = vld [vmem:[#allocation2 + $0x1f0] ss:$8 sps:$4 sm:$0xff]   ;;  %v1449_v38 = vld [vmem:[#allocation2 + $0xe0] ss:$8 sps:$4 sm:$0xff]  }
  0x1b   :  { %v1450_v37 = vld [vmem:[#allocation2 + $0x1e4] ss:$8 sps:$4 sm:$0xff]   ;;  %v1453_v39 = vld [vmem:[#allocation2 + $0xd4] ss:$8 sps:$4 sm:$0xff]   ;;  %v1452_v40 = vld [vmem:[#allocation2 + $0x1e0] ss:$8 sps:$4 sm:$0xff]  }
  0x1c   :  { %762 = vmatpush1.bf16.msra.mxu0 %v1413_v14  ;;  %v1456_v41 = vld [vmem:[#allocation2 + $0x1d4] ss:$8 sps:$4 sm:$0xff]   ;;  %v1455_v42 = vld [vmem:[#allocation2 + $0xd0] ss:$8 sps:$4 sm:$0xff]   ;;  %v1459_v43 = vld [vmem:[#allocation2 + $0xc4] ss:$8 sps:$4 sm:$0xff]  }
  0x1d   :  { %763 = vmatprep.subr.bf16.mxu0 %v1417_v15  ;;  %803 = vmatpush1.bf16.msra.mxu1 %v1416_v16  ;;  %v1458_v44 = vld [vmem:[#allocation2 + $0x1d0] ss:$8 sps:$4 sm:$0xff]   ;;  %v1462_v45 = vld [vmem:[#allocation2 + $0x1c4] ss:$8 sps:$4 sm:$0xff]   ;;  %v1461_v47 = vld [vmem:[#allocation2 + $0xc0] ss:$8 sps:$4 sm:$0xff]  }
  0x1e   :  { %804 = vmatprep.subr.bf16.mxu1 %v1420_v17  ;;  %v42_v46 = vld [vmem:[%s1783_s0] sm:$0xff]  ;;  %v1465_v49 = vld [vmem:[#allocation2 + $0xb4] ss:$8 sps:$4 sm:$0xff]   ;;  %v43_v50 = vld [vmem:[%s1783_s0 + $0x8] sm:$0xff]  ;;  %v1639_v15 = vmov 0  }
  0x1f   :  { %v1230_v48 = vcombine.high %v42_v46, %v42_v46  ;;  %v1464_v51 = vld [vmem:[#allocation2 + $0x1c0] ss:$8 sps:$4 sm:$0xff]   ;;  %v1232_v52 = vcombine.high %v43_v50, %v43_v50  ;;  %v1468_v53 = vld [vmem:[#allocation2 + $0x1b4] ss:$8 sps:$4 sm:$0xff]   ;;  %v1467_v54 = vld [vmem:[#allocation2 + $0xb0] ss:$8 sps:$4 sm:$0xff]   ;;  %v1229_v5 = vcombine.low %v42_v46, %v42_v46  ;;  %v1231_v8 = vcombine.low %v43_v50, %v43_v50 }
  0x20   :  { %764 = vmatpush1.bf16.msra.mxu0 %v1419_v18  ;;  %v1471_v55 = vld [vmem:[#allocation2 + $0xa4] ss:$8 sps:$4 sm:$0xff]   ;;  %v1470_v56 = vld [vmem:[#allocation2 + $0x1b0] ss:$8 sps:$4 sm:$0xff]   ;;  %v1473_v58 = vld [vmem:[#allocation2 + $0xa0] ss:$8 sps:$4 sm:$0xff]  }
  0x21   :  { %765 = vmatprep.subr.bf16.mxu0 %v1423_v19  ;;  %805 = vmatpush1.bf16.msra.mxu1 %v1422_v20  ;;  %v1474_v57 = vld [vmem:[#allocation2 + $0x1a4] ss:$8 sps:$4 sm:$0xff]   ;;  %v1477_v59 = vld [vmem:[#allocation2 + $0x94] ss:$8 sps:$4 sm:$0xff]   ;;  %v1476_v60 = vld [vmem:[#allocation2 + $0x1a0] ss:$8 sps:$4 sm:$0xff]  }
  0x22   :  { %806 = vmatprep.subr.bf16.mxu1 %v1426_v21  ;;  %787 = vmatprep.mubr.bf16.mxu0 %v1230_v48  ;;  %v1480_v61 = vld [vmem:[#allocation2 + $0x194] ss:$8 sps:$4 sm:$0xff]   ;;  %v1479_v62 = vld [vmem:[#allocation2 + $0x90] ss:$8 sps:$4 sm:$0xff]   ;;  %v1483_v63 = vld [vmem:[#allocation2 + $0x84] ss:$8 sps:$4 sm:$0xff]  }
  0x23   :  { %828 = vmatprep.mubr.bf16.mxu1 %v1232_v52  ;;  %v1482_v0 = vld [vmem:[#allocation2 + $0x190] ss:$8 sps:$4 sm:$0xff]   ;;  %v1486_v1 = vld [vmem:[#allocation2 + $0x184] ss:$8 sps:$4 sm:$0xff]   ;;  %v1485_v2 = vld [vmem:[#allocation2 + $0x80] ss:$8 sps:$4 sm:$0xff]  }
  0x24   :  { %766 = vmatpush1.bf16.msra.mxu0 %v1425_v22  ;;  %v1493_v3 = vld [vmem:[#allocation2 + $0x274] ss:$8 sps:$4 sm:$0xff]   ;;  %v1490_v4 = vld [vmem:[#allocation2 + $0x180] ss:$8 sps:$4 sm:$0xff]   ;;  %v1491_v7 = vld [vmem:[#allocation2 + $0x270] ss:$8 sps:$4 sm:$0xff]  }
  0x25   :  { %767 = vmatprep.subr.bf16.mxu0 %v1429_v23  ;;  %807 = vmatpush1.bf16.msra.mxu1 %v1428_v24  ;;  %v1519_v6 = vld [vmem:[#allocation2 + $0x374] ss:$8 sps:$4 sm:$0xff]   ;;  %v1498_v9 = vld [vmem:[#allocation2 + $0x264] ss:$8 sps:$4 sm:$0xff]   ;;  %v1517_v10 = vld [vmem:[#allocation2 + $0x370] ss:$8 sps:$4 sm:$0xff]  }
  0x26   :  { %808 = vmatprep.subr.bf16.mxu1 %v1432_v25  ;;  %v1525_v11 = vld [vmem:[#allocation2 + $0x364] ss:$8 sps:$4 sm:$0xff]   ;;  %v1496_v12 = vld [vmem:[#allocation2 + $0x260] ss:$8 sps:$4 sm:$0xff]   ;;  %v1501_v13 = vld [vmem:[#allocation2 + $0x254] ss:$8 sps:$4 sm:$0xff]  }
  0x27   :  { %v1523_v14 = vld [vmem:[#allocation2 + $0x360] ss:$8 sps:$4 sm:$0xff]   ;;  %v1531_v16 = vld [vmem:[#allocation2 + $0x354] ss:$8 sps:$4 sm:$0xff]   ;;  %v1499_v17 = vld [vmem:[#allocation2 + $0x250] ss:$8 sps:$4 sm:$0xff]  }
  0x28   :  { %768 = vmatpush1.bf16.msra.mxu0 %v1431_v26  ;;  %v1504_v18 = vld [vmem:[#allocation2 + $0x244] ss:$8 sps:$4 sm:$0xff]   ;;  %v1502_v19 = vld [vmem:[#allocation2 + $0x240] ss:$8 sps:$4 sm:$0xff]   ;;  %v1529_v20 = vld [vmem:[#allocation2 + $0x350] ss:$8 sps:$4 sm:$0xff]  }
  0x29   :  { %769 = vmatprep.subr.bf16.mxu0 %v1435_v27  ;;  %809 = vmatpush1.bf16.msra.mxu1 %v1434_v28  ;;  %v1537_v21 = vld [vmem:[#allocation2 + $0x344] ss:$8 sps:$4 sm:$0xff]   ;;  %v1507_v22 = vld [vmem:[#allocation2 + $0x234] ss:$8 sps:$4 sm:$0xff]   ;;  %v1535_v23 = vld [vmem:[#allocation2 + $0x340] ss:$8 sps:$4 sm:$0xff]  }
  0x2a   :  { %810 = vmatprep.subr.bf16.mxu1 %v1438_v29  ;;  %v1543_v24 = vld [vmem:[#allocation2 + $0x334] ss:$8 sps:$4 sm:$0xff]   ;;  %v1505_v26 = vld [vmem:[#allocation2 + $0x230] ss:$8 sps:$4 sm:$0xff]   ;;  %v1510_v28 = vld [vmem:[#allocation2 + $0x224] ss:$8 sps:$4 sm:$0xff]  }
  0x2b   :  { %v1694_v25 = vld [vmem:[%s1783_s0 + $0x10] sm:$0xff]  ;;  %v1540_v48 = vld [vmem:[#allocation2 + $0x2c4] ss:$8 sps:$4 sm:$0xff]  }
  0x2c   :  { %770 = vmatpush1.bf16.msra.mxu0 %v1437_v30  ;;  %v1234_v27 = vcombine.high %v1694_v25, %v1694_v25  ;;  %v1541_v29 = vld [vmem:[#allocation2 + $0x330] ss:$8 sps:$4 sm:$0xff]   ;;  %v1549_v30 = vld [vmem:[#allocation2 + $0x324] ss:$8 sps:$4 sm:$0xff]   ;;  %v1534_v46 = vld [vmem:[#allocation2 + $0x2d4] ss:$8 sps:$4 sm:$0xff]  }
  0x2d   :  { %771 = vmatprep.subr.bf16.mxu0 %v1441_v31  ;;  %811 = vmatpush1.bf16.msra.mxu1 %v1440_v32  ;;  %v1508_v31 = vld [vmem:[#allocation2 + $0x220] ss:$8 sps:$4 sm:$0xff]   ;;  %v1513_v32 = vld [vmem:[#allocation2 + $0x214] ss:$8 sps:$4 sm:$0xff]   ;;  %v1552_v52 = vld [vmem:[#allocation2 + $0x2a4] ss:$8 sps:$4 sm:$0xff]  }
  0x2e   :  { %812 = vmatprep.subr.bf16.mxu1 %v1444_v33  ;;  %v1547_v33 = vld [vmem:[#allocation2 + $0x320] ss:$8 sps:$4 sm:$0xff]   ;;  %v1546_v50 = vld [vmem:[#allocation2 + $0x2b4] ss:$8 sps:$4 sm:$0xff]  }
  0x30   :  { %772 = vmatpush2.bf16.msra.mxu0 %v1443_v34  ;;  %v1555_v34 = vld [vmem:[#allocation2 + $0x314] ss:$8 sps:$4 sm:$0xff]  }
  0x31   :  { %773 = vmatprep.subr.bf16.mxu0 %v1447_v35  ;;  %813 = vmatpush2.bf16.msra.mxu1 %v1446_v36  ;;  %v1511_v35 = vld [vmem:[#allocation2 + $0x210] ss:$8 sps:$4 sm:$0xff]   ;;  %v1516_v36 = vld [vmem:[#allocation2 + $0x204] ss:$8 sps:$4 sm:$0xff]  }
  0x32   :  { %814 = vmatprep.subr.bf16.mxu1 %v1450_v37  ;;  %v1553_v37 = vld [vmem:[#allocation2 + $0x310] ss:$8 sps:$4 sm:$0xff]  }
  0x34   :  { %774 = vmatpush2.bf16.msra.mxu0 %v1449_v38  ;;  %v1561_v38 = vld [vmem:[#allocation2 + $0x304] ss:$8 sps:$4 sm:$0xff]  }
  0x35   :  { %775 = vmatprep.subr.bf16.mxu0 %v1453_v39  ;;  %815 = vmatpush2.bf16.msra.mxu1 %v1452_v40  ;;  %v1514_v39 = vld [vmem:[#allocation2 + $0x200] ss:$8 sps:$4 sm:$0xff]   ;;  %v1522_v40 = vld [vmem:[#allocation2 + $0x2f4] ss:$8 sps:$4 sm:$0xff]  }
  0x36   :  { %816 = vmatprep.subr.bf16.mxu1 %v1456_v41  ;;  %v1559_v41 = vld [vmem:[#allocation2 + $0x300] ss:$8 sps:$4 sm:$0xff]  }
  0x38   :  { %776 = vmatpush2.bf16.msra.mxu0 %v1455_v42  ;;  %v1520_v42 = vld [vmem:[#allocation2 + $0x2f0] ss:$8 sps:$4 sm:$0xff]  }
  0x39   :  { %777 = vmatprep.subr.bf16.mxu0 %v1459_v43  ;;  %817 = vmatpush2.bf16.msra.mxu1 %v1458_v44  ;;  %v1528_v43 = vld [vmem:[#allocation2 + $0x2e4] ss:$8 sps:$4 sm:$0xff]   ;;  %v1565_v44 = vld [vmem:[%s1783_s0 + $0x18] ss:$0 sps:$4 sm:$0xff]  }
  0x3a   :  { %818 = vmatprep.subr.bf16.mxu1 %v1462_v45  ;;  %v1526_v45 = vld [vmem:[#allocation2 + $0x2e0] ss:$8 sps:$4 sm:$0xff]  }
  0x3c   :  { %778 = vmatpush2.bf16.msra.mxu0 %v1461_v47  ;;  %v1532_v47 = vld [vmem:[#allocation2 + $0x2d0] ss:$8 sps:$4 sm:$0xff]  }
  0x3d   :  { %779 = vmatprep.subr.bf16.mxu0 %v1465_v49  ;;  %819 = vmatpush2.bf16.msra.mxu1 %v1464_v51  ;;  %v1538_v49 = vld [vmem:[#allocation2 + $0x2c0] ss:$8 sps:$4 sm:$0xff]   ;;  %v1544_v51 = vld [vmem:[#allocation2 + $0x2b0] ss:$8 sps:$4 sm:$0xff]  }
  0x3e   :  { %820 = vmatprep.subr.bf16.mxu1 %v1468_v53  ;;  %v1550_v53 = vld [vmem:[#allocation2 + $0x2a0] ss:$8 sps:$4 sm:$0xff]  }
  0x40   :  { %780 = vmatpush2.bf16.msra.mxu0 %v1467_v54  ;;  %v1558_v54 = vld [vmem:[#allocation2 + $0x294] ss:$8 sps:$4 sm:$0xff]  }
  0x41   :  { %781 = vmatprep.subr.bf16.mxu0 %v1471_v55  ;;  %821 = vmatpush2.bf16.msra.mxu1 %v1470_v56  ;;  %v1556_v55 = vld [vmem:[#allocation2 + $0x290] ss:$8 sps:$4 sm:$0xff]   ;;  %v1564_v56 = vld [vmem:[#allocation2 + $0x284] ss:$8 sps:$4 sm:$0xff]  }
  0x42   :  { %822 = vmatprep.subr.bf16.mxu1 %v1474_v57  ;;  %v1562_v57 = vld [vmem:[#allocation2 + $0x280] ss:$8 sps:$4 sm:$0xff]  }
  0x44   :  { %782 = vmatpush2.bf16.msra.mxu0 %v1473_v58  ;;  %v1233_v58 = vcombine.low %v1694_v25, %v1694_v25 }
  0x45   :  { %783 = vmatprep.subr.bf16.mxu0 %v1477_v59  ;;  %823 = vmatpush2.bf16.msra.mxu1 %v1476_v60  ;;  %v1568_v59 = vld [vmem:[%s1788_s5 + $0x78] sm:$0xff]  }
  0x46   :  { %824 = vmatprep.subr.bf16.mxu1 %v1480_v61  ;;  %v1569_v60 = vld [vmem:[%s1788_s5 + $0x38] sm:$0xff]   ;;  %v1570_v61 = vld [vmem:[%s1788_s5 + $0x70] sm:$0xff]  }
  0x48   :  { %784 = vmatpush2.bf16.msra.mxu0 %v1479_v62  ;;  %v1571_v62 = vld [vmem:[%s1788_s5 + $0x30] sm:$0xff]  }
  0x49   :  { %785 = vmatprep.subr.bf16.mxu0 %v1483_v63  ;;  %825 = vmatpush2.bf16.msra.mxu1 %v1482_v0  ;;  %v1572_v63 = vld [vmem:[%s1788_s5 + $0x68] sm:$0xff]  }
  0x4a   :  { %826 = vmatprep.subr.bf16.mxu1 %v1486_v1  ;;  %v1573_v0 = vld [vmem:[%s1788_s5 + $0x28] sm:$0xff]   ;;  %v1574_v1 = vld [vmem:[%s1788_s5 + $0x60] sm:$0xff]  }
  0x4c   :  { %786 = vmatpush2.bf16.msra.mxu0 %v1485_v2  ;;  %v1575_v2 = vld [vmem:[%s1788_s5 + $0x20] sm:$0xff]  }
  0x4d   :  { %837 = vmatprep.subr.bf16.mxu0 %v1493_v3  ;;  %827 = vmatpush2.bf16.msra.mxu1 %v1490_v4  ;;  %v1576_v3 = vld [vmem:[%s1788_s5 + $0x58] sm:$0xff]  }
  0x4e   :  { %878 = vmatprep.subr.bf16.mxu1 %v1519_v6  ;;  %v1577_v4 = vld [vmem:[%s1788_s5 + $0x18] sm:$0xff]   ;;  %v1579_v6 = vld [vmem:[%s1788_s5 + $0x10] sm:$0xff]  }
  0x4f   :  { %788 = vmatmul.mubr.bf16.vlgmr.msra.gmra.mxu0 %v1229_v5  ;;  %v1578_v5 = vld [vmem:[%s1788_s5 + $0x50] sm:$0xff]  }
  0x50   :  { %838 = vmatpush1.bf16.msra.mxu0 %v1491_v7  ;;  %829 = vmatmul.mubr.bf16.vlgmr.msra.gmra.mxu1 %v1231_v8  ;;  %v1580_v7 = vld [vmem:[%s1788_s5 + $0x48] sm:$0xff]  }
  0x51   :  { %839 = vmatprep.subr.bf16.mxu0 %v1498_v9  ;;  %879 = vmatpush1.bf16.msra.mxu1 %v1517_v10  ;;  %v1581_v8 = vld [vmem:[%s1788_s5 + $0x8] sm:$0xff]   ;;  %v1582_v9 = vld [vmem:[%s1788_s5 + $0x40] sm:$0xff]  }
  0x52   :  { %910 = vmatprep.mubr.bf16.mxu1 %v1639_v15  ;;  %880 = vmatprep.subr.bf16.mxu1 %v1525_v11  ;;  %v1583_v10 = vld [vmem:[%s1788_s5] sm:$0xff]  }
  0x53   :  { %869 = vmatprep.mubr.bf16.mxu0 %v1234_v27 }
  0x54   :  { %840 = vmatpush1.bf16.msra.mxu0 %v1496_v12 }
  0x55   :  { %841 = vmatprep.subr.bf16.mxu0 %v1501_v13  ;;  %881 = vmatpush1.bf16.msra.mxu1 %v1523_v14 }
  0x56   :  { %882 = vmatprep.subr.bf16.mxu1 %v1531_v16 }
  0x58   :  { %842 = vmatpush1.bf16.msra.mxu0 %v1499_v17 }
  0x59   :  { %843 = vmatprep.subr.bf16.mxu0 %v1504_v18  ;;  %883 = vmatpush1.bf16.msra.mxu1 %v1529_v20 }
  0x5a   :  { %884 = vmatprep.subr.bf16.mxu1 %v1537_v21 }
  0x5c   :  { %844 = vmatpush1.bf16.msra.mxu0 %v1502_v19 }
  0x5d   :  { %845 = vmatprep.subr.bf16.mxu0 %v1507_v22  ;;  %885 = vmatpush1.bf16.msra.mxu1 %v1535_v23  ;;  %v160_v23 = vlaneseq }
  0x5e   :  { %886 = vmatprep.subr.bf16.mxu1 %v1543_v24 }
  0x5f   :  { %v161_v24 = vshrl.u32 %v160_v23, 7 }
  0x60   :  { %846 = vmatpush1.bf16.msra.mxu0 %v1505_v26  ;;  %v158_v26 = vld [vmem:[%s1785_s2] sm:$0x3] }
  0x61   :  { %847 = vmatprep.subr.bf16.mxu0 %v1510_v28  ;;  %887 = vmatpush1.bf16.msra.mxu1 %v1541_v29  ;;  %v1751_v25 = vsub.s32 0, %v161_v24  ;;  %v1756_v27 = vsub.s32 1, %v161_v24 }
  0x62   :  { %888 = vmatprep.subr.bf16.mxu1 %v1549_v30 }
  0x63   :  { %v163_v28 = vrot.slane %v158_v26, %v1751_v25  ;;  %v167_v29 = vrot.slane %v158_v26, %v1756_v27 }
  0x64   :  { %848 = vmatpush1.bf16.msra.mxu0 %v1508_v31 }
  0x65   :  { %849 = vmatprep.subr.bf16.mxu0 %v1513_v32  ;;  %889 = vmatpush1.bf16.msra.mxu1 %v1547_v33 }
  0x66   :  { %890 = vmatprep.subr.bf16.mxu1 %v1555_v34 }
  0x68   :  { %850 = vmatpush1.bf16.msra.mxu0 %v1511_v35 }
  0x69   :  { %851 = vmatprep.subr.bf16.mxu0 %v1516_v36  ;;  %891 = vmatpush1.bf16.msra.mxu1 %v1553_v37 }
  0x6a   :  { %892 = vmatprep.subr.bf16.mxu1 %v1561_v38 }
  0x6c   :  { %852 = vmatpush1.bf16.msra.mxu0 %v1514_v39 }
  0x6d   :  { %853 = vmatprep.subr.bf16.mxu0 %v1522_v40  ;;  %893 = vmatpush1.bf16.msra.mxu1 %v1559_v41 }
  0x6e   :  { %1365 = vmatprep.subr.bf16.mxu1 %v1568_v59 }
  0x70   :  { %854 = vmatpush2.bf16.msra.mxu0 %v1520_v42  ;;  %911 = vmatmul.mubr.bf16.vlgmr.msra.gmra.mxu1 %v1565_v44 }
  0x71   :  { %855 = vmatprep.subr.bf16.mxu0 %v1528_v43  ;;  %1366 = vmatpush3.bf16.msra.mxu1 %v1569_v60 }
  0x72   :  { %1367 = vmatprep.subr.bf16.mxu1 %v1570_v61 }
  0x74   :  { %856 = vmatpush2.bf16.msra.mxu0 %v1526_v45 }
  0x75   :  { %857 = vmatprep.subr.bf16.mxu0 %v1534_v46  ;;  %1368 = vmatpush3.bf16.msra.mxu1 %v1571_v62 }
  0x76   :  { %1369 = vmatprep.subr.bf16.mxu1 %v1572_v63 }
  0x78   :  { %858 = vmatpush2.bf16.msra.mxu0 %v1532_v47 }
  0x79   :  { %859 = vmatprep.subr.bf16.mxu0 %v1540_v48  ;;  %1370 = vmatpush3.bf16.msra.mxu1 %v1573_v0 }
  0x7a   :  { %1371 = vmatprep.subr.bf16.mxu1 %v1574_v1 }
  0x7c   :  { %860 = vmatpush2.bf16.msra.mxu0 %v1538_v49 }
  0x7d   :  { %861 = vmatprep.subr.bf16.mxu0 %v1546_v50  ;;  %1372 = vmatpush3.bf16.msra.mxu1 %v1575_v2 }
  0x7e   :  { %1373 = vmatprep.subr.bf16.mxu1 %v1576_v3 }
  0x80   :  { %862 = vmatpush2.bf16.msra.mxu0 %v1544_v51 }
  0x81   :  { %863 = vmatprep.subr.bf16.mxu0 %v1552_v52  ;;  %1374 = vmatpush3.bf16.msra.mxu1 %v1577_v4 }
  0x82   :  { %1375 = vmatprep.subr.bf16.mxu1 %v1578_v5 }
  0x84   :  { %864 = vmatpush2.bf16.msra.mxu0 %v1550_v53 }
  0x85   :  { %865 = vmatprep.subr.bf16.mxu0 %v1558_v54  ;;  %1376 = vmatpush3.bf16.msra.mxu1 %v1579_v6 }
  0x86   :  { %1377 = vmatprep.subr.bf16.mxu1 %v1580_v7 }
  0x88   :  { %866 = vmatpush2.bf16.msra.mxu0 %v1556_v55 }
  0x89   :  { %867 = vmatprep.subr.bf16.mxu0 %v1564_v56  ;;  %1378 = vmatpush3.bf16.msra.mxu1 %v1581_v8 }
  0x8a   :  { %1379 = vmatprep.subr.bf16.mxu1 %v1582_v9 }
  0x8c   :  { %868 = vmatpush2.bf16.msra.mxu0 %v1562_v57 }
  0x8d   :  { %1380 = vmatpush3.bf16.msra.mxu1 %v1583_v10 }
  0x8f   :  { %870 = vmatmul.mubr.bf16.vlgmr.msra.gmra.mxu0 %v1233_v58 }
 0x10f   :  { %v789_v11 = vpop.f32.mrf.mxu0 }
 0x110   :  { %v830_v13 = vpop.f32.mrf.mxu1  ;;  %v790_v30 = vadd.f32 %v789_v11, %v163_v28 }
 0x111   :  { %v791_v12 = vpop.f32.mrf.mxu0 }
 0x112   :  { %v832_v15 = vpop.f32.mrf.mxu1  ;;  %v792_v31 = vadd.f32 %v791_v12, %v167_v29  ;;  %v831_v32 = vadd.f32 %v830_v13, %v790_v30 }
 0x113   :  { %v793_v14 = vpop.f32.mrf.mxu0 }
 0x114   :  { %v834_v17 = vpop.f32.mrf.mxu1  ;;  %v833_v34 = vadd.f32 %v832_v15, %v792_v31  ;;  %v1640_v14 = vmov 1966171168  }
 0x115   :  { %v794_v16 = vpop.f32.mrf.mxu0  ;;  %v963_v15 = vunpack.c.l.s4 %v1640_v14 }
 0x116   :  { %v835_v18 = vpop.f32.mrf.mxu1 }
 0x117   :  { %v964_v16 = vunpack.c.0.s8 %v963_v15 }
 0x119   :  { %v967_v18 = vsub.s32 %v964_v16, %v161_v24  ;;  %v978_v24 = vld [vmem:[%s1787_s4] sm:$0x3]  ;;  %s1641_s4 = smov [#allocation5]  }
 0x11a   :  { %s1220_s26 = sshll.u32 %s1641_s4, 4  ;;  %s1221_s26 = int_to_ptr.vmem [resolvable:$true] %s1220_s26 }
 0x11b   :  { %p1617_p6 = scmp.lt.s32.totalorder %s1221_s26, %s1221_s26 }
 0x130   :  { %v912_v19 = vpop.f32.mrf.mxu1 }
 0x132   :  { %v914_v20 = vpop.f32.mrf.mxu1 }
 0x134   :  { %v916_v21 = vpop.f32.mrf.mxu1 }
 0x136   :  { %v917_v22 = vpop.f32.mrf.mxu1 }
 0x137   :  { %v954_v22 = vld [vmem:[%s1786_s3] sm:$0x3] }
 0x14f   :  { %v871_v33 = vpop.f32.mrf.mxu0 }
 0x150   :  { %v872_v35 = vadd.f32 %v871_v33, %v831_v32 }
 0x151   :  { %v873_v36 = vpop.f32.mrf.mxu0 }
 0x152   :  { %v1760_v37 = vadd.f32 %v912_v19, %v872_v35  ;;  %v874_v38 = vadd.f32 %v873_v36, %v833_v34 }
 0x153   :  { %v875_v39 = vpop.f32.mrf.mxu0 }
 0x154   :  { %v919_v40 = vrot.slane %v1760_v37, 4  ;;  %v934_v41 = vmul.f32 %v1760_v37, %v1760_v37  ;;  %v915_v42 = vadd.f32 %v914_v20, %v874_v38 }
 0x155   :  { %v876_v43 = vpop.f32.mrf.mxu0 }
 0x156   :  { %v920_v44 = vadd.f32 %v919_v40, %v1760_v37  ;;  %v936_v45 = vrot.slane %v934_v41, 4  ;;  %v925_v46 = vrot.slane %v915_v42, 4  ;;  %v935_v47 = vmul.f32 %v915_v42, %v915_v42 }
 0x158   :  { %v921_v48 = vrot.slane %v920_v44, 2  ;;  %v937_v49 = vadd.f32 %v936_v45, %v934_v41  ;;  %v926_v50 = vadd.f32 %v925_v46, %v915_v42  ;;  %v942_v51 = vrot.slane %v935_v47, 4 }
 0x15a   :  { %v922_v52 = vadd.f32 %v921_v48, %v920_v44  ;;  %v938_v53 = vrot.slane %v937_v49, 2  ;;  %v927_v54 = vrot.slane %v926_v50, 2  ;;  %v943_v55 = vadd.f32 %v942_v51, %v935_v47  ;;  %v1348_v48 = vld [vmem:[%s1789_s6] ss:$0 sm:$0xff]  ;;  %s1612_s6 = scalar_lea.vmem %s1221_s26, 128 }
 0x15b   :  { %p1613_p5 = scmp.ne.s32.totalorder %s1221_s26, %s1612_s6  ;;  %p1618_p7 = scmp.lt.s32.totalorder %s1612_s6, %s1612_s6 }
 0x15c   :  { %v923_v56 = vrot.slane %v922_v52, 1  ;;  %v939_v57 = vadd.f32 %v938_v53, %v937_v49  ;;  %v928_v58 = vadd.f32 %v927_v54, %v926_v50  ;;  %v944_v59 = vrot.slane %v943_v55, 2 }
 0x15d   :  { %p1619_p8 = por %p1618_p7, %p1617_p6 }
 0x15e   :  { %v924_v60 = vadd.f32 %v923_v56, %v922_v52  ;;  %v940_v61 = vrot.slane %v939_v57, 1  ;;  %v929_v62 = vrot.slane %v928_v58, 1  ;;  %v945_v63 = vadd.f32 %v944_v59, %v943_v55 }
 0x15f   :  { %p1620_p9 = pnand %p1619_p8, %p1613_p5 }
 0x160   :  { %v932_v0 = vmul.f32 0.125, %v924_v60  ;;  %v941_v1 = vadd.f32 %v940_v61, %v939_v57  ;;  %v946_v2 = vrot.slane %v945_v63, 1  ;;  %v930_v3 = vadd.f32 %v929_v62, %v928_v58 }
 0x162   :  { %v948_v4 = vmul.f32 0.125, %v941_v1  ;;  %v950_v5 = vmul.f32 %v932_v0, %v932_v0  ;;  %v947_v6 = vadd.f32 %v946_v2, %v945_v63  ;;  %v933_v7 = vmul.f32 0.125, %v930_v3 }
 0x164   :  { %v952_v8 = vsub.f32 %v948_v4, %v950_v5  ;;  %v949_v9 = vmul.f32 0.125, %v947_v6  ;;  %v951_v10 = vmul.f32 %v933_v7, %v933_v7 }
 0x166   :  { %v955_v11 = vadd.f32 1e-05, %v952_v8  ;;  %v953_v12 = vsub.f32 %v949_v9, %v951_v10 }
 0x168   :  { %v956_v13 = vadd.f32 1e-05, %v953_v12  ;;  %1584 = vrsqrt.f32 %v955_v11 }
 0x16a   :  { %1586 = vrsqrt.f32 %v956_v13 }
 0x175   :  { %v1585_v17 = vpop.eup %1584 }
 0x177   :  { %v1587_v19 = vpop.eup %1586 }
 0x178   :  { %v961_v20 = vcombine.low %v1585_v17, %v1587_v19 }
 0x17a   :  { %v968_v21 = vrot.slane %v961_v20, %v967_v18 }
 0x17c   :  { %v975_v23 = vrot.slane %v968_v21, %v967_v18 }
 0x17e   :  { %v977_v26 = vmul.f32 %v975_v23, %v954_v22 }
 0x180   :  { %v983_v28 = vrot.slane %v977_v26, %v1751_v25  ;;  %v987_v29 = vrot.slane %v977_v26, %v1756_v27 }
 0x182   :  { %v990_v30 = vmul.f32 %v983_v28, %v932_v0  ;;  %v991_v31 = vmul.f32 %v987_v29, %v933_v7  ;;  %v1012_v36 = vmul.f32 %v987_v29, %v915_v42  ;;  %v1011_v39 = vmul.f32 %v983_v28, %v1760_v37 }
 0x184   :  { %v994_v32 = vcombine.low %v990_v30, %v991_v31 }
 0x186   :  { %v1001_v33 = vrot.slane %v994_v32, %v967_v18 }
 0x188   :  { %v1008_v34 = vrot.slane %v1001_v33, %v967_v18 }
 0x18a   :  { %v1010_v35 = vsub.f32 %v978_v24, %v1008_v34 }
 0x18c   :  { %v1021_v38 = vrot.slane %v1010_v35, %v1756_v27  ;;  %v1017_v40 = vrot.slane %v1010_v35, %v1751_v25 }
 0x18e   :  { %v1025_v41 = vadd.f32 %v1021_v38, %v1012_v36  ;;  %v1024_v43 = vadd.f32 %v1017_v40, %v1011_v39 }
 0x190   :  { %v1027_v44 = vpack.c.bf16 %v1025_v41, %v1025_v41  ;;  %v1026_v45 = vpack.c.bf16 %v1024_v43, %v1024_v43 }
 0x192   :  { %1195 = vmatprep.mubr.bf16.mxu1 %v1027_v44 }
 0x193   :  { %1196 = vmatmul.mubr.bf16.vlgmr.msra.gmra.mxu1 %v1026_v45 }
 0x253   :  { %v1381_v46 = vpop.f32.mrf.mxu1 }
 0x255   :  { %v1382_v47 = vpop.f32.mrf.mxu1 }
 0x256   :  { %v1383_v49 = vadd.f32 %v1382_v47, %v1381_v46 }
 0x257   :  { %v1384_v42 = vpop.f32.mrf.mxu1 }
 0x258   :  { %v1198_v50 = vadd.f32 %v1383_v49, %v1348_v48 }
 0x259   :  { %v1385_v27 = vpop.f32.mrf.mxu1 }
 0x25a   :  { %1203 = vmax.xlane.f32.xlu0 %v1198_v50 }
 0x2e3   :  { %v1204_v37 = vpop.xlane.xlu0 %1203 }
 0x2e4   :  { %v1205_v51 = vsub.f32 %v1198_v50, %v1204_v37 }
 0x2e6   :  { %v1206_v25 = vmul.f32 1.442695, %v1205_v51 }
 0x2e8   :  { %1588 = vpow2.f32 %v1206_v25 }
 0x2f5   :  { %v1589_v52 = vpop.eup %1588 }
 0x2f6   :  { %1208 = vadd.xlane.f32.xlu0 %v1589_v52 }
 0x37f   :  { %v1209_v53 = vpop.xlane.xlu0 %1208 }
 0x380   :  { %1590 = vlog2.f32 %v1209_v53 }
 0x38d   :  { %v1591_v54 = vpop.eup %1590 }
 0x38e   :  { %v1211_v55 = vmul.f32 0.6931472, %v1591_v54 }
 0x390   :  { %v1212_v56 = vsub.f32 %v1205_v51, %v1211_v55 }
 0x392   :  { %1213 = vst [vmem:[#allocation5] sm:$0xff] %v1212_v56 }
 0x393   :  { %1623 = shalt.err (!%p1620_p9)
}
 0x394   :  { %1223 = dma.vmem_to_hbm [thread:$0]  %s1221_s26, 128, %s1790_s7, [#allocation4]  }
 0x395   :  { %1634 = dma.done.wait [#allocation4], 128  }
 0x396   :  { %1635 = vsyncadd [#allocation4], 4294967168 }
 0x397   :  { %1227 = vsyncpa [#allocation3], 1 }
 0x398   :  { %1228 = vsyncpa [#allocation4], 1 }

</bundles_post_ra>
